<compile_context>
chip_gen: v7x
topology: tpu7x:2x2x1
jax: 0.10.0
libtpu: 0.0.40
codegen_flags: <defaults>
</compile_context>

<pallas_src>
import math

import numpy as np
import jax
import jax.numpy as jnp
from jax.experimental import pallas as pl
from jax.experimental.pallas import tpu as pltpu


# ----------------------------------------------------------------------------
# DCT kernel construction (identical to the PyTorch initDCTKernel)
# ----------------------------------------------------------------------------
def initDCTKernel(N):
    kernel = np.zeros((N, N, N * N))
    cnum = 0
    for i in range(N):
        for j in range(N):
            ivec = np.linspace(0.5 * math.pi / N * i, (N - 0.5) * math.pi / N * i, num=N)
            ivec = np.cos(ivec)
            jvec = np.linspace(0.5 * math.pi / N * j, (N - 0.5) * math.pi / N * j, num=N)
            jvec = np.cos(jvec)
            slc = np.outer(ivec, jvec)
            if i == 0 and j == 0:
                slc = slc / N
            elif i * j == 0:
                slc = slc * np.sqrt(2) / N
            else:
                slc = slc * 2.0 / N
            kernel[:, :, cnum] = slc
            cnum += 1
    kernel = kernel[np.newaxis, :]
    kernel = np.transpose(kernel, (3, 0, 1, 2))  # (N*N, 1, N, N)
    return kernel


def _tap_order():
    """7x7 tap offsets in nested-ring order: 3x3 block first, then the 5x5
    ring, then the 7x7 ring — so taps[:9]/[:25]/[:49] are the 3/5/7 windows."""
    taps = []
    for lo, hi in ((0, 1), (2, 2), (3, 3)):
        for oy in range(-3, 4):
            for ox in range(-3, 4):
                if lo <= max(abs(oy), abs(ox)) <= hi:
                    taps.append((oy, ox))
    assert len(taps) == 49
    return taps


# ----------------------------------------------------------------------------
# Pallas kernels
# ----------------------------------------------------------------------------
def _freq_kernel(p_ref, w1_ref, b1_ref, w2_ref, b2_ref,
                 wf3_ref, wf5_ref, wf7_ref, o_ref):
    """Fused 3x3 / 5x5 / 7x7 DCT-conv + AdaptiveCombiner, one output tile.

    p_ref  : (3, 49, T) bf16  -- 7x7 im2col taps (nested-ring order), 3 branches
    w1_ref : (3, 83, 49) bf16 -- per-branch attention-conv1, DCT folded, scales stacked
    b1_ref : (83, 1)  f32
    w2_ref : (9, 83)  f32     -- block-diagonal attention-conv2 (3 rows / scale)
    b2_ref : (9, 1)   f32
    wf*_ref: (64, K)  bf16    -- final 1x1 conv, DCT folded (K = 9 / 25 / 49)
    o_ref  : (192, T) f32     -- [scale3 | scale5 | scale7] channel blocks
    """
    Pa = p_ref[0]
    Pb = p_ref[1]
    Pc = p_ref[2]

    # attention conv1 (all three scales at once, DCT folded): relu(W1 @ P + b1)
    h = (jnp.dot(w1_ref[0], Pa, preferred_element_type=jnp.float32)
         + jnp.dot(w1_ref[1], Pb, preferred_element_type=jnp.float32)
         + jnp.dot(w1_ref[2], Pc, preferred_element_type=jnp.float32)
         + b1_ref[...])
    h = jnp.maximum(h, 0.0)                                           # (83, T)

    # attention conv2 for all three scales (block-diagonal weight)
    s = jnp.dot(w2_ref[...], h, preferred_element_type=jnp.float32) + b2_ref[...]  # (9,T)

    for si, (K, wf_ref) in enumerate(((9, wf3_ref), (25, wf5_ref), (49, wf7_ref))):
        sc = s[3 * si:3 * si + 3]                                     # (3, T)
        sc = sc - jnp.max(sc, axis=0, keepdims=True)
        e = jnp.exp(sc)
        # approx reciprocal (EUP) — deliberate ~2^-12 divergence from exact softmax
        a = e * pl.reciprocal(jnp.sum(e, axis=0, keepdims=True), approx=True)
        # branch weighting on raw patches (f32 VPU), prefix rows = this scale's window
        m = a[0:1] * Pa[:K] + a[1:2] * Pb[:K] + a[2:3] * Pc[:K]       # (K, T) f32
        o_ref[64 * si:64 * si + 64, :] = jnp.dot(
            wf_ref[...], m.astype(jnp.bfloat16),
            preferred_element_type=jnp.float32)


def _make_emb_kernel(n_z_layers):
    """zemb (PixelNorm -> [dense -> SiLU]*n) + temb (Linear -> SiLU -> Linear)
    fused into a single kernel with two outputs."""
    def kernel(z_ref, e_ref, *refs):
        zo_ref, to_ref = refs[-2], refs[-1]
        wb = refs[:-2]

        # ---- z branch -------------------------------------------------------
        x = z_ref[...]
        x = x * jax.lax.rsqrt(jnp.mean(x * x, axis=1, keepdims=True) + 1e-8)
        for l in range(n_z_layers):
            w = wb[2 * l][...]
            b = wb[2 * l + 1][...]
            x = jnp.dot(x, w, preferred_element_type=jnp.float32) + b
            x = x * pl.reciprocal(1.0 + jnp.exp(-x), approx=True)      # SiLU (EUP)
        zo_ref[...] = x

        # ---- temb branch ----------------------------------------------------
        off = 2 * n_z_layers
        t = (jnp.dot(e_ref[...], wb[off][...], preferred_element_type=jnp.float32)
             + wb[off + 1][...])
        t = t * pl.reciprocal(1.0 + jnp.exp(-t), approx=True)          # SiLU (EUP)
        to_ref[...] = (jnp.dot(t, wb[off + 2][...], preferred_element_type=jnp.float32)
                       + wb[off + 3][...])
    return kernel


# ----------------------------------------------------------------------------
# Host-side glue: im2col, weight folding, tiling policy, wrappers
# ----------------------------------------------------------------------------
def _lane_tiling(hw, cap=2048):
    """Pad the lane axis to a multiple of 128, cap the tile so the working set
    fits every generation's VMEM (v7x: 64 MiB), and make the tile divide the
    padded extent (no silent full-size fallback)."""
    hwp = ((hw + 127) // 128) * 128
    t = min(hwp, cap)
    hwp = ((hwp + t - 1) // t) * t
    return t, hwp


def _im2col7(conds, taps, hwp):
    """(B, 3, 49, HWp) bf16 patch tensor: 7x7 taps (nested-ring order) of the
    three condition images; lane axis padded with zeros to HWp."""
    B, _, H, W = conds[0].shape
    pad = 3
    branches = []
    for c in conds:
        xp = jnp.pad(c[:, 0], ((0, 0), (pad, pad), (pad, pad)))
        rows = [xp[:, pad + oy:pad + oy + H, pad + ox:pad + ox + W]
                for (oy, ox) in taps]
        branches.append(jnp.stack(rows, axis=1).reshape(B, 49, H * W))
    P = jnp.stack(branches, axis=1)                       # (B, 3, 49, HW)
    if hwp > H * W:
        P = jnp.pad(P, ((0, 0), (0, 0), (0, 0), (0, hwp - H * W)))
    return P.astype(jnp.bfloat16)


def _fold_weights(params, taps):
    """Fold the DCT conv into the combiner weights and stack the three scales."""
    scales = ((3, "comb9"), (5, "comb25"), (7, "comb49"))
    w1_branches = [[], [], []]
    b1_rows, b2_rows, wfs = [], [], []
    w2bd = np.zeros((9, 83), np.float32)
    row_off = 0
    for si, (N, key) in enumerate(scales):
        K = N * N
        D = np.asarray(params[f"dct{N}"], dtype=np.float32)           # (K, K) row-major taps
        perm = [(oy + N // 2) * N + (ox + N // 2) for (oy, ox) in taps[:K]]
        Dp = D[:, perm]                                               # nested-ring tap order
        cp = params[key]
        w1 = np.asarray(cp["w1"], np.float32)
        b1 = np.asarray(cp["b1"], np.float32)
        w2 = np.asarray(cp["w2"], np.float32)
        b2 = np.asarray(cp["b2"], np.float32)
        wf = np.asarray(cp["wf"], np.float32)
        for c in range(3):
            blk = np.zeros((K, 49), np.float32)
            blk[:, :K] = w1[:, c * K:(c + 1) * K] @ Dp
            w1_branches[c].append(blk)
        b1_rows.append(b1.reshape(K, 1))
        w2bd[3 * si:3 * si + 3, row_off:row_off + K] = w2
        b2_rows.append(b2.reshape(3, 1))
        wfs.append(jnp.asarray(wf @ Dp, dtype=jnp.bfloat16))          # (64, K)
        row_off += K
    W1s = jnp.asarray(np.stack([np.concatenate(w1_branches[c], 0) for c in range(3)]),
                      dtype=jnp.bfloat16)                             # (3, 83, 49)
    B1 = jnp.asarray(np.concatenate(b1_rows, 0), dtype=jnp.float32)   # (83, 1)
    W2 = jnp.asarray(w2bd, dtype=jnp.float32)                         # (9, 83)
    B2 = jnp.asarray(np.concatenate(b2_rows, 0), dtype=jnp.float32)   # (9, 1)
    return W1s, B1, W2, B2, wfs[0], wfs[1], wfs[2]


def freq_features(conds, params):
    """Fused F.conv2d(cond_i, initDCTKernel(N), padding=N//2) + AdaptiveCombiner
    for N=3,5,7 — one pallas_call.  Returns (B, 192, H, W) = [c_feat1|2|3]."""
    B, _, H, W = conds[0].shape
    HW = H * W
    taps = _tap_order()
    T, HWp = _lane_tiling(HW)

    P = _im2col7(conds, taps, HWp)                                    # (B, 3, 49, HWp) bf16
    W1s, B1, W2, B2, WF3, WF5, WF7 = _fold_weights(params, taps)

    out = pl.pallas_call(
        _freq_kernel,
        out_shape=jax.ShapeDtypeStruct((B, 192, HWp), jnp.float32),
        grid=(B, HWp // T),
        in_specs=[
            pl.BlockSpec((None, 3, 49, T), lambda b, i: (b, 0, 0, i)),
            pl.BlockSpec((3, 83, 49), lambda b, i: (0, 0, 0)),
            pl.BlockSpec((83, 1), lambda b, i: (0, 0)),
            pl.BlockSpec((9, 83), lambda b, i: (0, 0)),
            pl.BlockSpec((9, 1), lambda b, i: (0, 0)),
            pl.BlockSpec((64, 9), lambda b, i: (0, 0)),
            pl.BlockSpec((64, 25), lambda b, i: (0, 0)),
            pl.BlockSpec((64, 49), lambda b, i: (0, 0)),
        ],
        out_specs=pl.BlockSpec((None, 192, T), lambda b, i: (b, 0, i)),
        compiler_params=pltpu.CompilerParams(
            dimension_semantics=("parallel", "parallel")),
    )(P, W1s, B1, W2, B2, WF3, WF5, WF7)

    return out[:, :, :HW].reshape(B, 192, H, W)


def embed_mlps(z, emb, z_mlp, temb1, temb2):
    """zemb (PixelNorm + MLP) and temb (Linear->SiLU->Linear) in one call."""
    B = z.shape[0]
    zdim = z_mlp[-1][0].shape[1]
    tdim = temb2[0].shape[1]
    args = [z, emb]
    for (w, b) in z_mlp:
        args += [w, b.reshape(1, -1)]
    args += [temb1[0], temb1[1].reshape(1, -1), temb2[0], temb2[1].reshape(1, -1)]
    return pl.pallas_call(
        _make_emb_kernel(len(z_mlp)),
        out_shape=(jax.ShapeDtypeStruct((B, zdim), jnp.float32),
                   jax.ShapeDtypeStruct((B, tdim), jnp.float32)),
    )(*args)


def get_timestep_embedding(timesteps, embedding_dim):
    half = embedding_dim // 2
    emb = math.log(10000.0) / (half - 1)
    emb = jnp.exp(jnp.arange(half, dtype=jnp.float32) * -emb)
    emb = timesteps.astype(jnp.float32)[:, None] * emb[None, :]
    return jnp.concatenate([jnp.sin(emb), jnp.cos(emb)], axis=1)


# ----------------------------------------------------------------------------
# Parameter construction (deterministic, synthetic)
# ----------------------------------------------------------------------------
def make_params(key, nz, z_emb_dim, nf, n_mlp):
    keys = jax.random.split(key, 32)
    k = iter(keys)
    s = 0.05

    def rnd(shape):
        return s * jax.random.normal(next(k), shape, dtype=jnp.float32)

    params = {}
    # z_transform MLP: dense(nz, z_emb_dim) + SiLU, then n_mlp x (dense + SiLU)
    zl = [(rnd((nz, z_emb_dim)), jnp.zeros((z_emb_dim,), jnp.float32))]
    for _ in range(n_mlp):
        zl.append((rnd((z_emb_dim, z_emb_dim)), jnp.zeros((z_emb_dim,), jnp.float32)))
    params["z_mlp"] = zl
    # conditional time-embedding MLP: Linear(nf, 4nf), Linear(4nf, 4nf)
    params["temb1"] = (rnd((nf, nf * 4)), jnp.zeros((nf * 4,), jnp.float32))
    params["temb2"] = (rnd((nf * 4, nf * 4)), jnp.zeros((nf * 4,), jnp.float32))
    # AdaptiveCombiners for C = 9, 25, 49
    for C in (9, 25, 49):
        params[f"comb{C}"] = dict(
            w1=rnd((C, 3 * C)), b1=0.01 * jnp.ones((C,), jnp.float32),
            w2=rnd((3, C)), b2=0.01 * jnp.ones((3,), jnp.float32),
            wf=rnd((64, C)),
        )
    # DCT kernels (deterministic, from initDCTKernel)
    for N in (3, 5, 7):
        params[f"dct{N}"] = jnp.asarray(
            initDCTKernel(N).reshape(N * N, N * N), dtype=jnp.float32)
    return params


# ----------------------------------------------------------------------------
# Forward (frequency branch + embeddings of NCSNpp_Freq)
# ----------------------------------------------------------------------------
def ncsnpp_freq_forward(params, x, cond1, cond2, cond3, time_cond, z, nf=64,
                        centered=False):
    # zemb = self.z_transform(z); temb = Linear2(SiLU(Linear1(timestep_emb)))
    emb = get_timestep_embedding(time_cond, nf)
    zemb, temb = embed_mlps(z, emb, params["z_mlp"], params["temb1"], params["temb2"])

    if not centered:
        x = 2.0 * x - 1.0

    c_all = freq_features((cond1, cond2, cond3), params)   # (B, 192, H, W)

    # TODO(synk): x_feat = ConvFeatBlock(x) and the subsequent layerspp U-Net
    # body (ResnetBlockBigGANpp_Adagn / AttnBlockpp / FIR Up-Downsample /
    # Combine) are not reproducible here (external source not provided).
    return dict(x_scaled=x, temb=temb, zemb=zemb,
                c_feat_all=c_all,
                c_feat1=c_all[:, 0:64], c_feat2=c_all[:, 64:128],
                c_feat3=c_all[:, 128:192])


# ----------------------------------------------------------------------------
# Pure-JAX reference (un-fused, mirrors the PyTorch module) for self-check
# ----------------------------------------------------------------------------
def reference_forward(params, x, cond1, cond2, cond3, time_cond, z, nf=64,
                      centered=False):
    zr = z / jnp.sqrt(jnp.mean(z * z, axis=1, keepdims=True) + 1e-8)
    for (w, b) in params["z_mlp"]:
        zr = zr @ w + b
        zr = zr * jax.nn.sigmoid(zr)
    emb = get_timestep_embedding(time_cond, nf)
    w1, b1 = params["temb1"]
    w2, b2 = params["temb2"]
    t = emb @ w1 + b1
    t = jax.nn.silu(t) @ w2 + b2
    xs = x if centered else 2.0 * x - 1.0

    B, _, H, W = cond1.shape
    feats = {}
    for idx, (N, key) in enumerate(((3, "comb9"), (5, "comb25"), (7, "comb49")), 1):
        D = params[f"dct{N}"]
        K, p = N * N, N // 2
        fs = []
        for c in (cond1, cond2, cond3):
            xp = jnp.pad(c[:, 0], ((0, 0), (p, p), (p, p)))
            pt = jnp.stack([xp[:, i:i + H, j:j + W]
                            for i in range(N) for j in range(N)],
                           axis=0).reshape(K, B * H * W)
            fs.append(D @ pt)                              # DCT conv
        cp = params[key]
        comb = jnp.concatenate(fs, axis=0)
        h = jnp.maximum(cp["w1"] @ comb + cp["b1"][:, None], 0.0)
        s = cp["w2"] @ h + cp["b2"][:, None]
        a = jax.nn.softmax(s, axis=0)
        cf = a[0:1] * fs[0] + a[1:2] * fs[1] + a[2:3] * fs[2]
        o = (cp["wf"] @ cf).reshape(64, B, H, W).transpose(1, 0, 2, 3)
        feats[f"c_feat{idx}"] = o
    return dict(x_scaled=xs, temb=t, zemb=zr, **feats)


# ----------------------------------------------------------------------------
if __name__ == "__main__":
    B, H, W = 2, 16, 16
    nz, z_emb_dim, nf, n_mlp = 32, 64, 64, 2

    key = jax.random.PRNGKey(0)
    k_par, kx, k1, k2, k3, kt, kz = jax.random.split(key, 7)
    params = make_params(k_par, nz, z_emb_dim, nf, n_mlp)

    x = jax.random.uniform(kx, (B, 1, H, W), dtype=jnp.float32)
    cond1 = jax.random.uniform(k1, (B, 1, H, W), dtype=jnp.float32)
    cond2 = jax.random.uniform(k2, (B, 1, H, W), dtype=jnp.float32)
    cond3 = jax.random.uniform(k3, (B, 1, H, W), dtype=jnp.float32)
    time_cond = jax.random.randint(kt, (B,), 0, 1000).astype(jnp.float32)
    z = jax.random.normal(kz, (B, nz), dtype=jnp.float32)

    out = ncsnpp_freq_forward(params, x, cond1, cond2, cond3, time_cond, z,
                              nf=nf, centered=False)
    out = jax.block_until_ready(out)

    assert out["zemb"].shape == (B, z_emb_dim)
    assert out["temb"].shape == (B, nf * 4)
    assert out["c_feat_all"].shape == (B, 192, H, W)
    assert out["c_feat1"].shape == (B, 64, H, W)
    assert out["c_feat2"].shape == (B, 64, H, W)
    assert out["c_feat3"].shape == (B, 64, H, W)
    assert all(bool(jnp.all(jnp.isfinite(v))) for v in out.values())

    # numerical check against the un-fused plain-JAX (f32) reference
    ref = reference_forward(params, x, cond1, cond2, cond3, time_cond, z,
                            nf=nf, centered=False)
    ref = jax.block_until_ready(ref)
    np.testing.assert_allclose(np.asarray(out["zemb"]), np.asarray(ref["zemb"]),
                               rtol=2e-3, atol=2e-3)
    np.testing.assert_allclose(np.asarray(out["temb"]), np.asarray(ref["temb"]),
                               rtol=2e-3, atol=2e-3)
    # c_feat tolerance is looser on purpose: kernel uses bf16 patches/weights
    # (f32 accumulation) + approx-reciprocal softmax, reference is exact f32.
    for k in ("c_feat1", "c_feat2", "c_feat3"):
        np.testing.assert_allclose(np.asarray(out[k]), np.asarray(ref[k]),
                                   rtol=1e-2, atol=1e-2)
    print("KERNEL_OK")
</pallas_src>

<mosaic_0001>
module attributes {stable_mosaic.version = 11 : i64} {
  func.func @kernel(%arg0: memref<2x32xf32, #tpu.memory_space<vmem>>, %arg1: memref<2x64xf32, #tpu.memory_space<vmem>>, %arg2: memref<32x64xf32, #tpu.memory_space<vmem>>, %arg3: memref<1x64xf32, #tpu.memory_space<vmem>>, %arg4: memref<64x64xf32, #tpu.memory_space<vmem>>, %arg5: memref<1x64xf32, #tpu.memory_space<vmem>>, %arg6: memref<64x64xf32, #tpu.memory_space<vmem>>, %arg7: memref<1x64xf32, #tpu.memory_space<vmem>>, %arg8: memref<64x256xf32, #tpu.memory_space<vmem>>, %arg9: memref<1x256xf32, #tpu.memory_space<vmem>>, %arg10: memref<256x256xf32, #tpu.memory_space<vmem>>, %arg11: memref<1x256xf32, #tpu.memory_space<vmem>>, %arg12: memref<2x64xf32, #tpu.memory_space<vmem>>, %arg13: memref<2x256xf32, #tpu.memory_space<vmem>>) attributes {dimension_semantics = [], scalar_prefetch = 0 : i64, scratch_operands = 0 : i64, tpu.core_type = #tpu.core_type<tc>} {
    %c0 = arith.constant 0 : index
    %c0_0 = arith.constant 0 : index
    %0 = vector.load %arg0[%c0, %c0_0] : memref<2x32xf32, #tpu.memory_space<vmem>>, vector<2x32xf32>
    %1 = arith.mulf %0, %0 : vector<2x32xf32>
    %cst = arith.constant dense<0.000000e+00> : vector<2xf32>
    %2 = vector.multi_reduction <add>, %1, %cst [1] : vector<2x32xf32> to vector<2xf32>
    %3 = vector.shape_cast %2 : vector<2xf32> to vector<2x1xf32>
    %cst_1 = arith.constant 3.200000e+01 : f32
    %4 = vector.broadcast %cst_1 : f32 to vector<2x1xf32>
    %5 = arith.divf %3, %4 : vector<2x1xf32>
    %cst_2 = arith.constant 9.99999993E-9 : f32
    %6 = vector.broadcast %cst_2 : f32 to vector<2x1xf32>
    %7 = arith.addf %5, %6 : vector<2x1xf32>
    %8 = math.rsqrt %7 : vector<2x1xf32>
    %9 = vector.broadcast %8 : vector<2x1xf32> to vector<2x32xf32>
    %10 = arith.mulf %0, %9 : vector<2x32xf32>
    %c0_3 = arith.constant 0 : index
    %c0_4 = arith.constant 0 : index
    %11 = vector.load %arg2[%c0_3, %c0_4] : memref<32x64xf32, #tpu.memory_space<vmem>>, vector<32x64xf32>
    %c0_5 = arith.constant 0 : index
    %c0_6 = arith.constant 0 : index
    %12 = vector.load %arg3[%c0_5, %c0_6] : memref<1x64xf32, #tpu.memory_space<vmem>>, vector<1x64xf32>
    %cst_7 = arith.constant dense<0.000000e+00> : vector<2x64xf32>
    %13 = tpu.matmul %10, %11, %cst_7 {dimension_numbers = #tpu.dot_dimension_numbers<[1], [0], [0], [1], [0, 0, 1, 1], [], []>} : vector<2x32xf32>, vector<32x64xf32>, vector<2x64xf32> -> vector<2x64xf32>
    %14 = vector.broadcast %12 : vector<1x64xf32> to vector<2x64xf32>
    %15 = arith.addf %13, %14 : vector<2x64xf32>
    %cst_8 = arith.constant 0.000000e+00 : f32
    %16 = vector.broadcast %cst_8 : f32 to vector<2x64xf32>
    %17 = arith.subf %16, %15 : vector<2x64xf32>
    %18 = math.exp %17 : vector<2x64xf32>
    %cst_9 = arith.constant 1.000000e+00 : f32
    %19 = vector.broadcast %cst_9 : f32 to vector<2x64xf32>
    %20 = arith.addf %19, %18 : vector<2x64xf32>
    %21 = tpu.reciprocal %20 {approx = true} : vector<2x64xf32> -> vector<2x64xf32>
    %22 = arith.mulf %15, %21 : vector<2x64xf32>
    %c0_10 = arith.constant 0 : index
    %c0_11 = arith.constant 0 : index
    %23 = vector.load %arg4[%c0_10, %c0_11] : memref<64x64xf32, #tpu.memory_space<vmem>>, vector<64x64xf32>
    %c0_12 = arith.constant 0 : index
    %c0_13 = arith.constant 0 : index
    %24 = vector.load %arg5[%c0_12, %c0_13] : memref<1x64xf32, #tpu.memory_space<vmem>>, vector<1x64xf32>
    %cst_14 = arith.constant dense<0.000000e+00> : vector<2x64xf32>
    %25 = tpu.matmul %22, %23, %cst_14 {dimension_numbers = #tpu.dot_dimension_numbers<[1], [0], [0], [1], [0, 0, 1, 1], [], []>} : vector<2x64xf32>, vector<64x64xf32>, vector<2x64xf32> -> vector<2x64xf32>
    %26 = vector.broadcast %24 : vector<1x64xf32> to vector<2x64xf32>
    %27 = arith.addf %25, %26 : vector<2x64xf32>
    %cst_15 = arith.constant 0.000000e+00 : f32
    %28 = vector.broadcast %cst_15 : f32 to vector<2x64xf32>
    %29 = arith.subf %28, %27 : vector<2x64xf32>
    %30 = math.exp %29 : vector<2x64xf32>
    %cst_16 = arith.constant 1.000000e+00 : f32
    %31 = vector.broadcast %cst_16 : f32 to vector<2x64xf32>
    %32 = arith.addf %31, %30 : vector<2x64xf32>
    %33 = tpu.reciprocal %32 {approx = true} : vector<2x64xf32> -> vector<2x64xf32>
    %34 = arith.mulf %27, %33 : vector<2x64xf32>
    %c0_17 = arith.constant 0 : index
    %c0_18 = arith.constant 0 : index
    %35 = vector.load %arg6[%c0_17, %c0_18] : memref<64x64xf32, #tpu.memory_space<vmem>>, vector<64x64xf32>
    %c0_19 = arith.constant 0 : index
    %c0_20 = arith.constant 0 : index
    %36 = vector.load %arg7[%c0_19, %c0_20] : memref<1x64xf32, #tpu.memory_space<vmem>>, vector<1x64xf32>
    %cst_21 = arith.constant dense<0.000000e+00> : vector<2x64xf32>
    %37 = tpu.matmul %34, %35, %cst_21 {dimension_numbers = #tpu.dot_dimension_numbers<[1], [0], [0], [1], [0, 0, 1, 1], [], []>} : vector<2x64xf32>, vector<64x64xf32>, vector<2x64xf32> -> vector<2x64xf32>
    %38 = vector.broadcast %36 : vector<1x64xf32> to vector<2x64xf32>
    %39 = arith.addf %37, %38 : vector<2x64xf32>
    %cst_22 = arith.constant 0.000000e+00 : f32
    %40 = vector.broadcast %cst_22 : f32 to vector<2x64xf32>
    %41 = arith.subf %40, %39 : vector<2x64xf32>
    %42 = math.exp %41 : vector<2x64xf32>
    %cst_23 = arith.constant 1.000000e+00 : f32
    %43 = vector.broadcast %cst_23 : f32 to vector<2x64xf32>
    %44 = arith.addf %43, %42 : vector<2x64xf32>
    %45 = tpu.reciprocal %44 {approx = true} : vector<2x64xf32> -> vector<2x64xf32>
    %46 = arith.mulf %39, %45 : vector<2x64xf32>
    %c0_24 = arith.constant 0 : index
    %c0_25 = arith.constant 0 : index
    %47 = vector.load %arg12[%c0_24, %c0_25] : memref<2x64xf32, #tpu.memory_space<vmem>>, vector<2x64xf32>
    tpu.vector_store %arg12[%c0_24, %c0_25], %46 {strides = array<i32>} : memref<2x64xf32, #tpu.memory_space<vmem>>, vector<2x64xf32>,
    %c0_26 = arith.constant 0 : index
    %c0_27 = arith.constant 0 : index
    %48 = vector.load %arg1[%c0_26, %c0_27] : memref<2x64xf32, #tpu.memory_space<vmem>>, vector<2x64xf32>
    %c0_28 = arith.constant 0 : index
    %c0_29 = arith.constant 0 : index
    %49 = vector.load %arg8[%c0_28, %c0_29] : memref<64x256xf32, #tpu.memory_space<vmem>>, vector<64x256xf32>
    %cst_30 = arith.constant dense<0.000000e+00> : vector<2x256xf32>
    %50 = tpu.matmul %48, %49, %cst_30 {dimension_numbers = #tpu.dot_dimension_numbers<[1], [0], [0], [1], [0, 0, 1, 1], [], []>} : vector<2x64xf32>, vector<64x256xf32>, vector<2x256xf32> -> vector<2x256xf32>
    %c0_31 = arith.constant 0 : index
    %c0_32 = arith.constant 0 : index
    %51 = vector.load %arg9[%c0_31, %c0_32] : memref<1x256xf32, #tpu.memory_space<vmem>>, vector<1x256xf32>
    %52 = vector.broadcast %51 : vector<1x256xf32> to vector<2x256xf32>
    %53 = arith.addf %50, %52 : vector<2x256xf32>
    %cst_33 = arith.constant 0.000000e+00 : f32
    %54 = vector.broadcast %cst_33 : f32 to vector<2x256xf32>
    %55 = arith.subf %54, %53 : vector<2x256xf32>
    %56 = math.exp %55 : vector<2x256xf32>
    %cst_34 = arith.constant 1.000000e+00 : f32
    %57 = vector.broadcast %cst_34 : f32 to vector<2x256xf32>
    %58 = arith.addf %57, %56 : vector<2x256xf32>
    %59 = tpu.reciprocal %58 {approx = true} : vector<2x256xf32> -> vector<2x256xf32>
    %60 = arith.mulf %53, %59 : vector<2x256xf32>
    %c0_35 = arith.constant 0 : index
    %c0_36 = arith.constant 0 : index
    %61 = vector.load %arg10[%c0_35, %c0_36] : memref<256x256xf32, #tpu.memory_space<vmem>>, vector<256x256xf32>
    %cst_37 = arith.constant dense<0.000000e+00> : vector<2x256xf32>
    %62 = tpu.matmul %60, %61, %cst_37 {dimension_numbers = #tpu.dot_dimension_numbers<[1], [0], [0], [1], [0, 0, 1, 1], [], []>} : vector<2x256xf32>, vector<256x256xf32>, vector<2x256xf32> -> vector<2x256xf32>
    %c0_38 = arith.constant 0 : index
    %c0_39 = arith.constant 0 : index
    %63 = vector.load %arg11[%c0_38, %c0_39] : memref<1x256xf32, #tpu.memory_space<vmem>>, vector<1x256xf32>
    %64 = vector.broadcast %63 : vector<1x256xf32> to vector<2x256xf32>
    %65 = arith.addf %62, %64 : vector<2x256xf32>
    %c0_40 = arith.constant 0 : index
    %c0_41 = arith.constant 0 : index
    %66 = vector.load %arg13[%c0_40, %c0_41] : memref<2x256xf32, #tpu.memory_space<vmem>>, vector<2x256xf32>
    tpu.vector_store %arg13[%c0_40, %c0_41], %65 {strides = array<i32>} : memref<2x256xf32, #tpu.memory_space<vmem>>, vector<2x256xf32>,
    return
  }
}

</mosaic_0001>

<bundles_post_ra>
// kernel: tpu_custom_call.1
= control target key start
LH: loop header
LB: loop body
LE: loop exit
PB: predicated region body
PF: predicated region fallthrough
CT: control target
= control target key end

     0   :  { %19 = vsyncpa [#allocation3], 0  ;;  %s1367_s0 = inlined_call_operand.hbm [shape: f32[2,32], index: 0, kind: input, shape index: {}]   ;;  %s1368_s1 = inlined_call_operand.vmem [shape: f32[2,64], index: 1, kind: input, shape index: {}]   ;;  %s1369_s2 = inlined_call_operand.hbm [shape: f32[32,64], index: 2, kind: input, shape index: {}]   ;;  %s1370_s3 = inlined_call_operand.vmem [shape: f32[1,64], index: 3, kind: input, shape index: {}]   ;;  %s1371_s4 = inlined_call_operand.hbm [shape: f32[64,64], index: 4, kind: input, shape index: {}]   ;;  %s1372_s5 = inlined_call_operand.vmem [shape: f32[1,64], index: 5, kind: input, shape index: {}]   ;;  %s1373_s6 = inlined_call_operand.hbm [shape: f32[64,64], index: 6, kind: input, shape index: {}]   ;;  %s1374_s7 = inlined_call_operand.vmem [shape: f32[1,64], index: 7, kind: input, shape index: {}]   ;;  %s1375_s8 = inlined_call_operand.hbm [shape: f32[64,256], index: 8, kind: input, shape index: {}]   ;;  %s1376_s9 = inlined_call_operand.vmem [shape: f32[1,256], index: 9, kind: input, shape index: {}]   ;;  %s1377_s10 = inlined_call_operand.hbm [shape: f32[256,256], index: 10, kind: input, shape index: {}]   ;;  %s1378_s11 = inlined_call_operand.vmem [shape: f32[1,256], index: 11, kind: input, shape index: {}]   ;;  %s1379_s12 = inlined_call_operand.hbm [shape: f32[2,64], index: 12, kind: output, shape index: {0}]   ;;  %s1380_s13 = inlined_call_operand.hbm [shape: f32[2,256], index: 13, kind: output, shape index: {1}]  }
   0x1   :  { %20 = vsyncpa [#allocation6], 0 }
   0x2   :  { %21 = vsyncpa [#allocation9], 0 }
   0x3   :  { %22 = vsyncpa [#allocation12], 0 }
   0x4   :  { %23 = vsyncpa [#allocation4], 0 }
   0x5   :  { %24 = vsyncpa [#allocation15], 0  ;;  %s1139_s25 = smov [#allocation5]   ;;  %s951_s29 = scalar_lea.hbm %s1369_s2, 512 }
   0x6   :  { %s42_s26 = sshll.u32 %s1139_s25, 4  ;;  %p952_p0 = scmp.ne.s32.totalorder %s1369_s2, %s951_s29  ;;  %s43_s26 = int_to_ptr.vmem [resolvable:$true] %s42_s26 }
   0x7   :  { %p955_p1 = scmp.lt.u32.totalorder %s951_s29, %s1369_s2 }
   0x9   :  { %p957_p2 = pnand %p955_p1, %p952_p0 }
   0xb   :  { %960 = shalt.err (!%p957_p2)
}
   0xc   :  { %s961_s17 = scalar_lea.vmem %s43_s26, 512  ;;  %p966_p4 = scmp.lt.s32.totalorder %s43_s26, %s43_s26 }
   0xd   :  { %p962_p3 = scmp.ne.s32.totalorder %s43_s26, %s961_s17  ;;  %p967_p5 = scmp.lt.s32.totalorder %s961_s17, %s961_s17 }
   0xf   :  { %p968_p6 = por %p967_p5, %p966_p4 }
  0x11   :  { %p969_p7 = pnand %p968_p6, %p962_p3 }
  0x13   :  { %972 = shalt.err (!%p969_p7)
}
  0x14   :  { %s1140_s18 = smov 128   ;;  %s1141_s19 = smov 8  }
  0x15   :  { %48 = dma.hbm_to_vmem [thread:$0]  %s1369_s2, 512, %s43_s26, [#allocation6], %s1140_s18, %s1140_s18, %s1141_s19  }
  0x16   :  { %s1142_s22 = smov [#allocation8]   ;;  %s1143_s24 = smov [#allocation2]  }
  0x17   :  { %s70_s23 = sshll.u32 %s1142_s22, 4  ;;  %s31_s25 = sshll.u32 %s1143_s24, 4  ;;  %s71_s23 = int_to_ptr.vmem [resolvable:$true] %s70_s23  ;;  %s32_s25 = int_to_ptr.vmem [resolvable:$true] %s31_s25 }
  0x18   :  { %s973_s29 = scalar_lea.hbm %s1373_s6, 1024 }
  0x19   :  { %p974_p8 = scmp.ne.s32.totalorder %s1373_s6, %s973_s29  ;;  %p977_p9 = scmp.lt.u32.totalorder %s973_s29, %s1373_s6 }
  0x1b   :  { %p979_p10 = pnand %p977_p9, %p974_p8 }
  0x1d   :  { %982 = shalt.err (!%p979_p10)
}
  0x1e   :  { %s983_s2 = scalar_lea.vmem %s71_s23, 1024  ;;  %p988_p12 = scmp.lt.s32.totalorder %s71_s23, %s71_s23 }
  0x1f   :  { %p984_p11 = scmp.ne.s32.totalorder %s71_s23, %s983_s2  ;;  %p989_p13 = scmp.lt.s32.totalorder %s983_s2, %s983_s2 }
  0x21   :  { %p990_p0 = por %p989_p13, %p988_p12 }
  0x23   :  { %p991_p1 = pnand %p990_p0, %p984_p11 }
  0x25   :  { %994 = shalt.err (!%p991_p1)
}
  0x26   :  { %76 = dma.hbm_to_vmem [thread:$0]  %s1373_s6, 1024, %s71_s23, [#allocation9], %s1140_s18, %s1140_s18, %s1141_s19  }
  0x27   :  { %s995_s22 = scalar_lea.hbm %s1367_s0, 32 }
  0x28   :  { %p996_p2 = scmp.ne.s32.totalorder %s1367_s0, %s995_s22  ;;  %p999_p3 = scmp.lt.u32.totalorder %s995_s22, %s1367_s0 }
  0x2a   :  { %p1001_p4 = pnand %p999_p3, %p996_p2 }
  0x2c   :  { %1004 = shalt.err (!%p1001_p4)
}
  0x2d   :  { %s1005_s30 = scalar_lea.vmem %s32_s25, 32  ;;  %p1010_p6 = scmp.lt.s32.totalorder %s32_s25, %s32_s25 }
  0x2e   :  { %p1006_p5 = scmp.ne.s32.totalorder %s32_s25, %s1005_s30  ;;  %p1011_p7 = scmp.lt.s32.totalorder %s1005_s30, %s1005_s30 }
  0x30   :  { %p1012_p8 = por %p1011_p7, %p1010_p6 }
  0x32   :  { %p1013_p9 = pnand %p1012_p8, %p1006_p5 }
  0x34   :  { %1016 = shalt.err (!%p1013_p9)
}
  0x35   :  { %34 = dma.hbm_to_vmem [thread:$0]  %s1367_s0, 32, %s32_s25, [#allocation3]  }
  0x36   :  { %s1144_s14 = smov [#allocation7]   ;;  %s1145_s16 = smov [#allocation10]  }
  0x37   :  { %s56_s15 = sshll.u32 %s1144_s14, 4  ;;  %s84_s2 = sshll.u32 %s1145_s16, 4  ;;  %s57_s15 = int_to_ptr.vmem [resolvable:$true] %s56_s15  ;;  %s85_s2 = int_to_ptr.vmem [resolvable:$true] %s84_s2 }
  0x38   :  { %s1017_s20 = scalar_lea.hbm %s1371_s4, 1024 }
  0x39   :  { %p1018_p10 = scmp.ne.s32.totalorder %s1371_s4, %s1017_s20  ;;  %p1021_p11 = scmp.lt.u32.totalorder %s1017_s20, %s1371_s4 }
  0x3b   :  { %p1023_p12 = pnand %p1021_p11, %p1018_p10 }
  0x3d   :  { %1026 = shalt.err (!%p1023_p12)
}
  0x3e   :  { %s1027_s0 = scalar_lea.vmem %s57_s15, 1024  ;;  %p1032_p0 = scmp.lt.s32.totalorder %s57_s15, %s57_s15 }
  0x3f   :  { %p1028_p13 = scmp.ne.s32.totalorder %s57_s15, %s1027_s0  ;;  %p1033_p1 = scmp.lt.s32.totalorder %s1027_s0, %s1027_s0 }
  0x41   :  { %p1034_p2 = por %p1033_p1, %p1032_p0 }
  0x43   :  { %p1035_p3 = pnand %p1034_p2, %p1028_p13 }
  0x45   :  { %1038 = shalt.err (!%p1035_p3)
}
  0x46   :  { %62 = dma.hbm_to_vmem [thread:$0]  %s1371_s4, 1024, %s57_s15, [#allocation6], %s1140_s18, %s1140_s18, %s1141_s19  }
  0x47   :  { %s1039_s6 = scalar_lea.hbm %s1375_s8, 2048 }
  0x48   :  { %p1040_p4 = scmp.ne.s32.totalorder %s1375_s8, %s1039_s6  ;;  %p1043_p5 = scmp.lt.u32.totalorder %s1039_s6, %s1375_s8 }
  0x4a   :  { %p1045_p6 = pnand %p1043_p5, %p1040_p4 }
  0x4c   :  { %1048 = shalt.err (!%p1045_p6)
}
  0x4d   :  { %s1049_s17 = scalar_lea.vmem %s85_s2, 2048  ;;  %p1054_p8 = scmp.lt.s32.totalorder %s85_s2, %s85_s2 }
  0x4e   :  { %p1050_p7 = scmp.ne.s32.totalorder %s85_s2, %s1049_s17  ;;  %p1055_p9 = scmp.lt.s32.totalorder %s1049_s17, %s1049_s17 }
  0x50   :  { %p1056_p10 = por %p1055_p9, %p1054_p8 }
  0x52   :  { %p1057_p11 = pnand %p1056_p10, %p1050_p7 }
  0x54   :  { %1060 = shalt.err (!%p1057_p11)
}
  0x55   :  { %s1146_s4 = smov 256   ;;  %s1147_s18 = smov 16  }
  0x56   :  { %90 = dma.hbm_to_vmem [thread:$0]  %s1375_s8, 2048, %s85_s2, [#allocation9], %s1146_s4, %s1146_s4, %s1147_s18  }
  0x57   :  { %s1148_s20 = smov [#allocation11]   ;;  %s1061_s27 = scalar_lea.hbm %s1377_s10, 8192 }
  0x58   :  { %s98_s21 = sshll.u32 %s1148_s20, 4  ;;  %p1062_p12 = scmp.ne.s32.totalorder %s1377_s10, %s1061_s27  ;;  %s99_s21 = int_to_ptr.vmem [resolvable:$true] %s98_s21 }
  0x59   :  { %p1065_p13 = scmp.lt.u32.totalorder %s1061_s27, %s1377_s10 }
  0x5b   :  { %p1067_p0 = pnand %p1065_p13, %p1062_p12 }
  0x5d   :  { %1070 = shalt.err (!%p1067_p0)
}
  0x5e   :  { %s1071_s30 = scalar_lea.vmem %s99_s21, 8192  ;;  %p1076_p2 = scmp.lt.s32.totalorder %s99_s21, %s99_s21 }
  0x5f   :  { %p1072_p1 = scmp.ne.s32.totalorder %s99_s21, %s1071_s30  ;;  %p1077_p3 = scmp.lt.s32.totalorder %s1071_s30, %s1071_s30 }
  0x61   :  { %p1078_p4 = por %p1077_p3, %p1076_p2 }
  0x63   :  { %p1079_p5 = pnand %p1078_p4, %p1072_p1 }
  0x65   :  { %1082 = shalt.err (!%p1079_p5)
}
  0x66   :  { %104 = dma.hbm_to_vmem [thread:$0]  %s1377_s10, 8192, %s99_s21, [#allocation12], %s1146_s4, %s1146_s4, %s1147_s18  }
  0x67   :  { %1127 = dma.done.wait [#allocation3], 32  }
  0x68   :  { %1128 = vsyncadd [#allocation3], 4294967264 }
  0x69   :  { %1129 = dma.done.wait [#allocation6], 1536  }
  0x6a   :  { %1130 = vsyncadd [#allocation6], 4294965760 }
  0x6b   :  { %1131 = dma.done.wait [#allocation9], 3072  }
  0x6c   :  { %1132 = vsyncadd [#allocation9], 4294964224 }
  0x6d   :  { %1133 = dma.done.wait [#allocation12], 8192  }
  0x6e   :  { %1134 = vsyncadd [#allocation12], 4294959104  ;;  %v125_v0 = vld [vmem:[#allocation2] sm:$0x3]  ;;  %vm127_vm0 = vcmask 254976   ;;  %v136_v3 = vld [vmem:[#allocation5] sm:$0xff] }
  0x6f   :  { %v126_v1 = vmul.f32 %v125_v0, %v125_v0  ;;  %v137_v4 = vld [vmem:[#allocation5 + $0x8] sm:$0xff]  ;;  %v138_v5 = vld [vmem:[#allocation5 + $0x10] sm:$0xff]  ;;  %v1149_v6 = vmov 0.0|0.0   ;;  %v139_v8 = vld [vmem:[#allocation5 + $0x18] sm:$0xff]  ;;  %vm1150_vm1 = vmmov 0   ;;  %v1151_v9 = vmov 0.0  }
  0x70   :  { %804 = vmatprep.subr.bf16.mxu1 %v1149_v6  ;;  %v805_v7 = vpack.c.bf16 %v137_v4, %v136_v3  ;;  %763 = vmatprep.mubr.msk.f32.mxu1 %vm1150_vm1, %v1151_v9  ;;  %v808_v10 = vpack.c.bf16 %v139_v8, %v138_v5  ;;  %vm147_vm2 = vcmask 261120   ;;  %v227_v16 = vld [vmem:[#allocation7] sm:$0xff]  ;;  %v228_v17 = vld [vmem:[#allocation7 + $0x8] sm:$0xff]  ;;  %v229_v19 = vld [vmem:[#allocation7 + $0x10] sm:$0xff]  ;;  %vm242_vm3 = vcmask 523264  }
  0x71   :  { %v128_v2 = vsel %vm127_vm0, %v126_v1, 0.0  ;;  %v811_v18 = vpack.c.bf16 %v228_v17, %v227_v16  ;;  %v230_v20 = vld [vmem:[#allocation7 + $0x18] sm:$0xff]  ;;  %v231_v22 = vld [vmem:[#allocation7 + $0x20] sm:$0xff]  ;;  %v232_v23 = vld [vmem:[#allocation7 + $0x28] sm:$0xff]  ;;  %vm416_vm4 = vcmask 517120  }
  0x72   :  { %129 = vadd.xlane.f32.xlu0 %v128_v2  ;;  %806 = vmatpush3.bf16.msra.mxu1 %v805_v7  ;;  %v814_v21 = vpack.c.bf16 %v230_v20, %v229_v19  ;;  %v817_v24 = vpack.c.bf16 %v232_v23, %v231_v22  ;;  %v233_v25 = vld [vmem:[#allocation7 + $0x30] sm:$0xff]  ;;  %v234_v26 = vld [vmem:[#allocation7 + $0x38] sm:$0xff]  ;;  %v322_v38 = vld [vmem:[#allocation8] sm:$0xff] }
  0x73   :  { %807 = vmatprep.subr.bf16.mxu1 %v1149_v6  ;;  %v820_v27 = vpack.c.bf16 %v234_v26, %v233_v25  ;;  %v724_v28 = vld [vmem:[%s1370_s3] ss:$0 sm:$0xff]  ;;  %v323_v39 = vld [vmem:[#allocation8 + $0x8] sm:$0xff]  ;;  %v324_v41 = vld [vmem:[#allocation8 + $0x10] sm:$0xff] }
  0x74   :  { %v823_v40 = vpack.c.bf16 %v323_v39, %v322_v38  ;;  %v325_v42 = vld [vmem:[#allocation8 + $0x18] sm:$0xff]  ;;  %v326_v44 = vld [vmem:[#allocation8 + $0x20] sm:$0xff]  ;;  %v327_v45 = vld [vmem:[#allocation8 + $0x28] sm:$0xff] }
  0x75   :  { %v826_v43 = vpack.c.bf16 %v325_v42, %v324_v41  ;;  %v829_v46 = vpack.c.bf16 %v327_v45, %v326_v44  ;;  %v328_v47 = vld [vmem:[#allocation8 + $0x30] sm:$0xff]  ;;  %v329_v48 = vld [vmem:[#allocation8 + $0x38] sm:$0xff]  ;;  %v420_v50 = vld [vmem:[#allocation10 + $0x8] sm:$0xff] }
  0x76   :  { %809 = vmatpush3.bf16.msra.mxu1 %v808_v10  ;;  %v832_v49 = vpack.c.bf16 %v329_v48, %v328_v47  ;;  %v422_v51 = vld [vmem:[#allocation10 + $0x18] sm:$0xff]  ;;  %v534_v53 = vld [vmem:[#allocation11 + $0x8] sm:$0xff]  ;;  %v533_v55 = vld [vmem:[#allocation11] sm:$0xff] }
  0x77   :  { %810 = vmatprep.subr.bf16.mxu1 %v1149_v6  ;;  %v834_v52 = vpack.c.bf16 %v422_v51, %v420_v50  ;;  %v536_v54 = vld [vmem:[#allocation11 + $0x18] sm:$0xff]  ;;  %v535_v57 = vld [vmem:[#allocation11 + $0x10] sm:$0xff]  ;;  %v538_v58 = vld [vmem:[#allocation11 + $0x28] sm:$0xff] }
  0x78   :  { %v850_v56 = vpack.c.bf16 %v536_v54, %v534_v53  ;;  %v540_v59 = vld [vmem:[#allocation11 + $0x38] sm:$0xff]  ;;  %v852_v60 = vpack.c.bf16 %v535_v57, %v533_v55  ;;  %v537_v62 = vld [vmem:[#allocation11 + $0x20] sm:$0xff]  ;;  %v539_v63 = vld [vmem:[#allocation11 + $0x30] sm:$0xff] }
  0x79   :  { %v854_v61 = vpack.c.bf16 %v540_v59, %v538_v58  ;;  %v544_v1 = vld [vmem:[#allocation11 + $0x58] sm:$0xff]  ;;  %v856_v2 = vpack.c.bf16 %v539_v63, %v537_v62  ;;  %v541_v4 = vld [vmem:[#allocation11 + $0x40] sm:$0xff]  ;;  %v543_v5 = vld [vmem:[#allocation11 + $0x50] sm:$0xff] }
  0x7a   :  { %851 = vmatprep.subr.bf16.mxu0 %v850_v56  ;;  %v548_v7 = vld [vmem:[#allocation11 + $0x78] sm:$0xff]  ;;  %v860_v8 = vpack.c.bf16 %v543_v5, %v541_v4  ;;  %v419_v22 = vld [vmem:[#allocation10] sm:$0xff]  ;;  %v421_v23 = vld [vmem:[#allocation10 + $0x10] sm:$0xff] }
  0x7b   :  { %853 = vmatpush1.bf16.msra.mxu0 %v852_v60  ;;  %v426_v25 = vld [vmem:[#allocation10 + $0x38] sm:$0xff]  ;;  %v432_v38 = vld [vmem:[#allocation10 + $0x68] sm:$0xff]  ;;  %v431_v42 = vld [vmem:[#allocation10 + $0x60] sm:$0xff] }
  0x7c   :  { %855 = vmatprep.subr.bf16.mxu0 %v854_v61  ;;  %v434_v39 = vld [vmem:[#allocation10 + $0x78] sm:$0xff]  ;;  %v550_v45 = vld [vmem:[#allocation11 + $0x88] sm:$0xff]  ;;  %v549_v48 = vld [vmem:[#allocation11 + $0x80] sm:$0xff] }
  0x7d   :  { %v846_v41 = vpack.c.bf16 %v434_v39, %v432_v38  ;;  %v554_v51 = vld [vmem:[#allocation11 + $0xa8] sm:$0xff]  ;;  %v553_v54 = vld [vmem:[#allocation11 + $0xa0] sm:$0xff]  ;;  %v555_v55 = vld [vmem:[#allocation11 + $0xb0] sm:$0xff] }
  0x7e   :  { %v872_v56 = vpack.c.bf16 %v555_v55, %v553_v54  ;;  %v558_v57 = vld [vmem:[#allocation11 + $0xc8] sm:$0xff]  ;;  %v560_v58 = vld [vmem:[#allocation11 + $0xd8] sm:$0xff]  ;;  %v557_v60 = vld [vmem:[#allocation11 + $0xc0] sm:$0xff] }
  0x7f   :  { %857 = vmatpush1.bf16.msra.mxu0 %v856_v2  ;;  %v874_v59 = vpack.c.bf16 %v560_v58, %v558_v57  ;;  %v559_v61 = vld [vmem:[#allocation11 + $0xd0] sm:$0xff]  ;;  %v562_v63 = vld [vmem:[#allocation11 + $0xe8] sm:$0xff]  ;;  %v561_v2 = vld [vmem:[#allocation11 + $0xe0] sm:$0xff]  ;;  %v437_v57 = vlaneseq }
  0x80   :  { %v876_v62 = vpack.c.bf16 %v559_v61, %v557_v60  ;;  %v566_v5 = vld [vmem:[#allocation11 + $0x108] sm:$0xff]  ;;  %v585_v39 = vld [vmem:[#allocation11 + $0x1a0] sm:$0xff] }
  0x81   :  { %v438_v60 = vshrl.u32 %v437_v57, 7 }
  0x83   :  { %v439_v61 = vsub.s32 0, %v438_v60 }
  0xff   :  { %v130_v11 = vpop.xlane.xlu0 %129 }
 0x100   :  { %v132_v12 = vmul.f32 0.03125, %v130_v11  ;;  %v545_v11 = vld [vmem:[#allocation11 + $0x60] sm:$0xff] }
 0x102   :  { %v133_v13 = vadd.f32 1e-08, %v132_v12  ;;  %v547_v12 = vld [vmem:[#allocation11 + $0x70] sm:$0xff] }
 0x104   :  { %929 = vrsqrt.f32 %v133_v13  ;;  %v864_v13 = vpack.c.bf16 %v547_v12, %v545_v11  ;;  %v570_v12 = vld [vmem:[#allocation11 + $0x128] sm:$0xff] }
 0x10e   :  { %v930_v14 = vpop.eup %929 }
 0x10f   :  { %v135_v15 = vmul.f32 %v930_v14, %v125_v0  ;;  %v542_v0 = vld [vmem:[#allocation11 + $0x48] sm:$0xff]  ;;  %v726_v14 = vld [vmem:[%s1372_s5] ss:$0 sm:$0xff] }
 0x110   :  { %v858_v3 = vpack.c.bf16 %v544_v1, %v542_v0  ;;  %v564_v0 = vld [vmem:[#allocation11 + $0xf8] sm:$0xff] }
 0x111   :  { %764 = vmatmul.mubr.msk.f32.vlgmr.msra.gmra.mrb[0].mxu1 %vm147_vm2, %v135_v15  ;;  %v878_v1 = vpack.c.bf16 %v564_v0, %v562_v63  ;;  %v443_v63 = vsub.s32 1, %v438_v60 }
 0x112   :  { %782 = vmatprep.mubr.msk.f32.mxu1 %vm1150_vm1, %v1151_v9  ;;  %812 = vmatpush3.bf16.msra.mxu1 %v811_v18 }
 0x113   :  { %813 = vmatprep.subr.bf16.mxu1 %v1149_v6  ;;  %859 = vmatprep.subr.bf16.mxu0 %v858_v3  ;;  %v563_v3 = vld [vmem:[#allocation11 + $0xf0] sm:$0xff] }
 0x114   :  { %861 = vmatpush1.bf16.msra.mxu0 %v860_v8  ;;  %v880_v4 = vpack.c.bf16 %v563_v3, %v561_v2  ;;  %v565_v8 = vld [vmem:[#allocation11 + $0x100] sm:$0xff] }
 0x116   :  { %815 = vmatpush3.bf16.msra.mxu1 %v814_v21 }
 0x117   :  { %816 = vmatprep.subr.bf16.mxu1 %v1149_v6 }
 0x11a   :  { %818 = vmatpush3.bf16.msra.mxu1 %v817_v24  ;;  %v424_v24 = vld [vmem:[#allocation10 + $0x28] sm:$0xff] }
 0x11b   :  { %819 = vmatprep.subr.bf16.mxu1 %v1149_v6 }
 0x11e   :  { %821 = vmatpush3.bf16.msra.mxu1 %v820_v27  ;;  %v836_v27 = vpack.c.bf16 %v421_v23, %v419_v22  ;;  %v575_v22 = vld [vmem:[#allocation11 + $0x150] sm:$0xff] }
 0x11f   :  { %822 = vmatprep.subr.bf16.mxu1 %v1149_v6 }
 0x1e4   :  { %v217_v29 = vpop.f32.mrb[0].mxu1 }
 0x1e5   :  { %v218_v30 = vadd.f32 %v724_v28, %v217_v29  ;;  %v765_v31 = vpop.f32.mrb[1].mxu1  ;;  %v838_v29 = vpack.c.bf16 %v426_v25, %v424_v24  ;;  %v578_v24 = vld [vmem:[#allocation11 + $0x168] sm:$0xff]  ;;  %v580_v25 = vld [vmem:[#allocation11 + $0x178] sm:$0xff] }
 0x1e6   :  { %v425_v31 = vld [vmem:[#allocation10 + $0x30] sm:$0xff] }
 0x1e7   :  { %v221_v32 = vsub.f32 0.0, %v218_v30 }
 0x1e9   :  { %v222_v33 = vmul.f32 1.442695, %v221_v32  ;;  %v428_v32 = vld [vmem:[#allocation10 + $0x48] sm:$0xff] }
 0x1eb   :  { %931 = vpow2.f32 %v222_v33  ;;  %v430_v33 = vld [vmem:[#allocation10 + $0x58] sm:$0xff] }
 0x1f5   :  { %v932_v34 = vpop.eup %931 }
 0x1f6   :  { %v224_v35 = vadd.f32 1.0, %v932_v34 }
 0x1f8   :  { %933 = vrcp.f32 %v224_v35  ;;  %v842_v35 = vpack.c.bf16 %v430_v33, %v428_v32  ;;  %v581_v33 = vld [vmem:[#allocation11 + $0x180] sm:$0xff] }
 0x202   :  { %v934_v36 = vpop.eup %933 }
 0x203   :  { %v226_v37 = vmul.f32 %v934_v36, %v218_v30  ;;  %v423_v30 = vld [vmem:[#allocation10 + $0x20] sm:$0xff] }
 0x204   :  { %v840_v34 = vpack.c.bf16 %v425_v31, %v423_v30  ;;  %v427_v36 = vld [vmem:[#allocation10 + $0x40] sm:$0xff]  ;;  %v582_v30 = vld [vmem:[#allocation11 + $0x188] sm:$0xff]  ;;  %v584_v31 = vld [vmem:[#allocation11 + $0x198] sm:$0xff] }
 0x205   :  { %783 = vmatmul.mubr.msk.f32.vlgmr.msra.gmra.mrb[2].mxu1 %vm242_vm3, %v226_v37  ;;  %v429_v37 = vld [vmem:[#allocation10 + $0x50] sm:$0xff]  ;;  %v898_v32 = vpack.c.bf16 %v584_v31, %v582_v30 }
 0x206   :  { %801 = vmatprep.mubr.msk.f32.mxu1 %vm1150_vm1, %v1151_v9  ;;  %824 = vmatpush3.bf16.msra.mxu1 %v823_v40  ;;  %v844_v40 = vpack.c.bf16 %v429_v37, %v427_v36  ;;  %v586_v36 = vld [vmem:[#allocation11 + $0x1a8] sm:$0xff]  ;;  %v588_v37 = vld [vmem:[#allocation11 + $0x1b8] sm:$0xff] }
 0x207   :  { %825 = vmatprep.subr.bf16.mxu1 %v1149_v6  ;;  %v902_v38 = vpack.c.bf16 %v588_v37, %v586_v36 }
 0x20a   :  { %827 = vmatpush3.bf16.msra.mxu1 %v826_v43  ;;  %v433_v43 = vld [vmem:[#allocation10 + $0x70] sm:$0xff] }
 0x20b   :  { %828 = vmatprep.subr.bf16.mxu1 %v1149_v6  ;;  %v848_v44 = vpack.c.bf16 %v433_v43, %v431_v42  ;;  %v590_v42 = vld [vmem:[#allocation11 + $0x1c8] sm:$0xff]  ;;  %v592_v43 = vld [vmem:[#allocation11 + $0x1d8] sm:$0xff] }
 0x20e   :  { %830 = vmatpush3.bf16.msra.mxu1 %v829_v46  ;;  %v552_v46 = vld [vmem:[#allocation11 + $0x98] sm:$0xff] }
 0x20f   :  { %831 = vmatprep.subr.bf16.mxu1 %v1149_v6  ;;  %v546_v6 = vld [vmem:[#allocation11 + $0x68] sm:$0xff]  ;;  %v866_v47 = vpack.c.bf16 %v552_v46, %v550_v45  ;;  %v591_v45 = vld [vmem:[#allocation11 + $0x1d0] sm:$0xff] }
 0x210   :  { %v862_v10 = vpack.c.bf16 %v548_v7, %v546_v6  ;;  %v568_v6 = vld [vmem:[#allocation11 + $0x118] sm:$0xff] }
 0x211   :  { %v882_v7 = vpack.c.bf16 %v568_v6, %v566_v5 }
 0x212   :  { %833 = vmatpush3.bf16.msra.mxu1 %v832_v49  ;;  %863 = vmatprep.subr.bf16.mxu0 %v862_v10  ;;  %v551_v49 = vld [vmem:[#allocation11 + $0x90] sm:$0xff] }
 0x213   :  { %835 = vmatprep.subr.bf16.mxu1 %v834_v52  ;;  %865 = vmatpush1.bf16.msra.mxu0 %v864_v13  ;;  %v868_v50 = vpack.c.bf16 %v551_v49, %v549_v48  ;;  %v556_v52 = vld [vmem:[#allocation11 + $0xb8] sm:$0xff]  ;;  %v567_v10 = vld [vmem:[#allocation11 + $0x110] sm:$0xff] }
 0x214   :  { %867 = vmatprep.subr.bf16.mxu0 %v866_v47  ;;  %v870_v53 = vpack.c.bf16 %v556_v52, %v554_v51  ;;  %v884_v11 = vpack.c.bf16 %v567_v10, %v565_v8  ;;  %v572_v13 = vld [vmem:[#allocation11 + $0x138] sm:$0xff]  ;;  %v594_v47 = vld [vmem:[#allocation11 + $0x1e8] sm:$0xff]  ;;  %v595_v51 = vld [vmem:[#allocation11 + $0x1f0] sm:$0xff] }
 0x215   :  { %v596_v48 = vld [vmem:[#allocation11 + $0x1f8] sm:$0xff] }
 0x216   :  { %v910_v49 = vpack.c.bf16 %v596_v48, %v594_v47 }
 0x217   :  { %869 = vmatpush1.bf16.msra.mxu0 %v868_v50  ;;  %v593_v50 = vld [vmem:[#allocation11 + $0x1e0] sm:$0xff] }
 0x218   :  { %871 = vmatprep.subr.bf16.mxu0 %v870_v53  ;;  %v912_v52 = vpack.c.bf16 %v595_v51, %v593_v50  ;;  %v728_v53 = vld [vmem:[%s1374_s7] ss:$0 sm:$0xff]  ;;  %s1152_s7 = smov [#allocation13]  }
 0x21b   :  { %873 = vmatpush1.bf16.msra.mxu0 %v872_v56 }
 0x21c   :  { %875 = vmatprep.subr.bf16.mxu0 %v874_v59 }
 0x21f   :  { %877 = vmatpush1.bf16.msra.mxu0 %v876_v62  ;;  %v435_v62 = vld [vmem:[%s1376_s9] sm:$0x3]  ;;  %s698_s9 = sshll.u32 %s1152_s7, 4  ;;  %s699_s9 = int_to_ptr.vmem [resolvable:$true] %s698_s9 }
 0x220   :  { %879 = vmatprep.subr.bf16.mxu0 %v878_v1  ;;  %v440_v0 = vrot.slane %v435_v62, %v439_v61  ;;  %v444_v1 = vrot.slane %v435_v62, %v443_v63  ;;  %s1083_s4 = scalar_lea.vmem %s699_s9, 32  ;;  %p1088_p7 = scmp.lt.s32.totalorder %s699_s9, %s699_s9 }
 0x221   :  { %p1084_p6 = scmp.ne.s32.totalorder %s699_s9, %s1083_s4  ;;  %p1089_p8 = scmp.lt.s32.totalorder %s1083_s4, %s1083_s4 }
 0x223   :  { %881 = vmatpush1.bf16.msra.mxu0 %v880_v4  ;;  %p1090_p9 = por %p1089_p8, %p1088_p7 }
 0x224   :  { %883 = vmatprep.subr.bf16.mxu0 %v882_v7 }
 0x225   :  { %p1091_p10 = pnand %p1090_p9, %p1084_p6 }
 0x227   :  { %885 = vmatpush1.bf16.msra.mxu0 %v884_v11 }
 0x2d8   :  { %v312_v15 = vpop.f32.mrb[2].mxu1 }
 0x2d9   :  { %v313_v16 = vadd.f32 %v726_v14, %v312_v15  ;;  %v784_v17 = vpop.f32.mrb[3].mxu1  ;;  %v886_v14 = vpack.c.bf16 %v572_v13, %v570_v12  ;;  %v569_v15 = vld [vmem:[#allocation11 + $0x120] sm:$0xff] }
 0x2db   :  { %v316_v18 = vsub.f32 0.0, %v313_v16  ;;  %887 = vmatprep.subr.bf16.mxu0 %v886_v14 }
 0x2dd   :  { %v317_v19 = vmul.f32 1.442695, %v316_v18  ;;  %v574_v18 = vld [vmem:[#allocation11 + $0x148] sm:$0xff] }
 0x2df   :  { %935 = vpow2.f32 %v317_v19  ;;  %v576_v19 = vld [vmem:[#allocation11 + $0x158] sm:$0xff] }
 0x2e9   :  { %v936_v20 = vpop.eup %935 }
 0x2ea   :  { %v319_v21 = vadd.f32 1.0, %v936_v20  ;;  %v890_v20 = vpack.c.bf16 %v576_v19, %v574_v18 }
 0x2ec   :  { %937 = vrcp.f32 %v319_v21  ;;  %v573_v21 = vld [vmem:[#allocation11 + $0x140] sm:$0xff] }
 0x2ed   :  { %v892_v23 = vpack.c.bf16 %v575_v22, %v573_v21 }
 0x2f6   :  { %v938_v26 = vpop.eup %937 }
 0x2f7   :  { %v321_v28 = vmul.f32 %v938_v26, %v313_v16  ;;  %v571_v16 = vld [vmem:[#allocation11 + $0x130] sm:$0xff]  ;;  %v894_v26 = vpack.c.bf16 %v580_v25, %v578_v24 }
 0x2f8   :  { %v888_v17 = vpack.c.bf16 %v571_v16, %v569_v15 }
 0x2f9   :  { %802 = vmatmul.mubr.msk.f32.vlgmr.msra.gmra.mrb[4].mxu1 %vm242_vm3, %v321_v28  ;;  %v579_v28 = vld [vmem:[#allocation11 + $0x170] sm:$0xff] }
 0x2fa   :  { %837 = vmatpush1.bf16.msra.mxu1 %v836_v27  ;;  %514 = vmatprep.mubr.f32.mxu1 %v1151_v9  ;;  %v418_v9 = vld [vmem:[%s1368_s1] sm:$0x3]  ;;  %v577_v27 = vld [vmem:[#allocation11 + $0x160] sm:$0xff] }
 0x2fb   :  { %839 = vmatprep.subr.bf16.mxu1 %v838_v29  ;;  %889 = vmatpush1.bf16.msra.mxu0 %v888_v17  ;;  %v896_v29 = vpack.c.bf16 %v579_v28, %v577_v27 }
 0x2fc   :  { %891 = vmatprep.subr.bf16.mxu0 %v890_v20 }
 0x2fe   :  { %841 = vmatpush1.bf16.msra.mxu1 %v840_v34  ;;  %v583_v34 = vld [vmem:[#allocation11 + $0x190] sm:$0xff] }
 0x2ff   :  { %843 = vmatprep.subr.bf16.mxu1 %v842_v35  ;;  %893 = vmatpush1.bf16.msra.mxu0 %v892_v23  ;;  %v900_v35 = vpack.c.bf16 %v583_v34, %v581_v33 }
 0x300   :  { %895 = vmatprep.subr.bf16.mxu0 %v894_v26 }
 0x302   :  { %845 = vmatpush1.bf16.msra.mxu1 %v844_v40  ;;  %v587_v40 = vld [vmem:[#allocation11 + $0x1b0] sm:$0xff] }
 0x303   :  { %847 = vmatprep.subr.bf16.mxu1 %v846_v41  ;;  %897 = vmatpush1.bf16.msra.mxu0 %v896_v29  ;;  %v904_v41 = vpack.c.bf16 %v587_v40, %v585_v39 }
 0x304   :  { %899 = vmatprep.subr.bf16.mxu0 %v898_v32 }
 0x306   :  { %849 = vmatpush1.bf16.msra.mxu1 %v848_v44  ;;  %v906_v44 = vpack.c.bf16 %v592_v43, %v590_v42 }
 0x307   :  { %901 = vmatpush1.bf16.msra.mxu0 %v900_v35 }
 0x308   :  { %903 = vmatprep.subr.bf16.mxu0 %v902_v38 }
 0x309   :  { %730 = vmatmul.mubr.msk.f32.vlgmr.msra.gmra.mrb[6].mxu1 %vm242_vm3, %v418_v9  ;;  %v589_v9 = vld [vmem:[#allocation11 + $0x1c0] sm:$0xff] }
 0x30a   :  { %v908_v46 = vpack.c.bf16 %v591_v45, %v589_v9 }
 0x30b   :  { %905 = vmatpush1.bf16.msra.mxu0 %v904_v41 }
 0x30c   :  { %907 = vmatprep.subr.bf16.mxu0 %v906_v44 }
 0x30f   :  { %909 = vmatpush1.bf16.msra.mxu0 %v908_v46 }
 0x310   :  { %911 = vmatprep.subr.bf16.mxu0 %v910_v49 }
 0x313   :  { %913 = vmatpush1.bf16.msra.mxu0 %v912_v52 }
 0x3cc   :  { %v406_v54 = vpop.f32.mrb[4].mxu1 }
 0x3cd   :  { %v407_v55 = vadd.f32 %v728_v53, %v406_v54  ;;  %v803_v56 = vpop.f32.mrb[5].mxu1 }
 0x3cf   :  { %v410_v58 = vsub.f32 0.0, %v407_v55 }
 0x3d1   :  { %v411_v59 = vmul.f32 1.442695, %v410_v58 }
 0x3d3   :  { %939 = vpow2.f32 %v411_v59 }
 0x3dc   :  { %v516_v2 = vpop.f32.mrb[6].mxu1 }
 0x3dd   :  { %v940_v3 = vpop.eup %939  ;;  %v517_v4 = vadd.f32 %v516_v2, %v440_v0  ;;  %v518_v5 = vpop.f32.mrb[7].mxu1 }
 0x3de   :  { %v413_v6 = vadd.f32 1.0, %v940_v3  ;;  %v519_v7 = vadd.f32 %v518_v5, %v444_v1 }
 0x3df   :  { %v521_v8 = vsub.f32 0.0, %v517_v4 }
 0x3e0   :  { %941 = vrcp.f32 %v413_v6  ;;  %v522_v10 = vsub.f32 0.0, %v519_v7 }
 0x3e1   :  { %v523_v11 = vmul.f32 1.442695, %v521_v8 }
 0x3e2   :  { %v525_v12 = vmul.f32 1.442695, %v522_v10 }
 0x3e3   :  { %943 = vpow2.f32 %v523_v11 }
 0x3e4   :  { %945 = vpow2.f32 %v525_v12 }
 0x3ea   :  { %v942_v13 = vpop.eup %941 }
 0x3eb   :  { %v415_v14 = vmul.f32 %v942_v13, %v407_v55 }
 0x3ed   :  { %v944_v15 = vpop.eup %943  ;;  %417 = vst.msk [vmem:[#allocation13] sm:$0x3] %vm416_vm4, %v415_v14 }
 0x3ee   :  { %v946_v16 = vpop.eup %945  ;;  %v527_v17 = vadd.f32 1.0, %v944_v15 }
 0x3ef   :  { %v528_v18 = vadd.f32 1.0, %v946_v16 }
 0x3f0   :  { %947 = vrcp.f32 %v527_v17 }
 0x3f1   :  { %949 = vrcp.f32 %v528_v18 }
 0x3fa   :  { %v948_v19 = vpop.eup %947 }
 0x3fb   :  { %v950_v20 = vpop.eup %949  ;;  %v531_v22 = vmul.f32 %v948_v19, %v517_v4 }
 0x3fc   :  { %v532_v21 = vmul.f32 %v950_v20, %v519_v7 }
 0x3fe   :  { %673 = vmatprep.mubr.f32.mxu0 %v532_v21 }
 0x3ff   :  { %674 = vmatmul.mubr.f32.vlgmr.msra.gmra.mrb[0].mxu0 %v531_v22 }
 0x400   :  { %1094 = shalt.err (!%p1091_p10)
}
 0x401   :  { %s1095_s15 = scalar_lea.hbm %s1379_s12, 32 }
 0x402   :  { %p1096_p11 = scmp.ne.s32.totalorder %s1379_s12, %s1095_s15  ;;  %p1099_p12 = scmp.lt.u32.totalorder %s1095_s15, %s1379_s12 }
 0x404   :  { %p1101_p13 = pnand %p1099_p12, %p1096_p11 }
 0x406   :  { %1104 = shalt.err (!%p1101_p13)
}
 0x407   :  { %701 = dma.vmem_to_hbm [thread:$0]  %s699_s9, 32, %s1379_s12, [#allocation4]   ;;  %v597_v23 = vld [vmem:[%s1378_s11] sm:$0x3] }
 0x408   :  { %v602_v24 = vrot.slane %v597_v23, %v439_v61  ;;  %v606_v25 = vrot.slane %v597_v23, %v443_v63  ;;  %s1153_s29 = smov [#allocation14]  }
 0x409   :  { %s708_s30 = sshll.u32 %s1153_s29, 4  ;;  %s709_s30 = int_to_ptr.vmem [resolvable:$true] %s708_s30 }
 0x40a   :  { %s1105_s8 = scalar_lea.vmem %s709_s30, 64  ;;  %p1110_p1 = scmp.lt.s32.totalorder %s709_s30, %s709_s30 }
 0x40b   :  { %p1106_p0 = scmp.ne.s32.totalorder %s709_s30, %s1105_s8  ;;  %p1111_p2 = scmp.lt.s32.totalorder %s1105_s8, %s1105_s8 }
 0x40d   :  { %p1112_p3 = por %p1111_p2, %p1110_p1 }
 0x40f   :  { %p1113_p4 = pnand %p1112_p3, %p1106_p0 }
 0x4d2   :  { %v675_v26 = vpop.f32.mrb[0].mxu0 }
 0x4d3   :  { %v676_v27 = vadd.f32 %v675_v26, %v602_v24  ;;  %v677_v28 = vpop.f32.mrb[1].mxu0 }
 0x4d4   :  { %v678_v29 = vadd.f32 %v677_v28, %v606_v25 }
 0x4d6   :  { %v682_v30 = vcombine.low %v676_v27, %v678_v29 }
 0x4d8   :  { %731 = vst.sshfl [vmem:[#allocation14] sm:$0x33 pattern:$0x76325410] %v682_v30 }
 0x4d9   :  { %1116 = shalt.err (!%p1113_p4)
}
 0x4da   :  { %s1117_s2 = scalar_lea.hbm %s1380_s13, 64 }
 0x4db   :  { %p1118_p5 = scmp.ne.s32.totalorder %s1380_s13, %s1117_s2  ;;  %p1121_p6 = scmp.lt.u32.totalorder %s1117_s2, %s1380_s13 }
 0x4dd   :  { %p1123_p7 = pnand %p1121_p6, %p1118_p5 }
 0x4df   :  { %1126 = shalt.err (!%p1123_p7)
}
 0x4e0   :  { %711 = dma.vmem_to_hbm [thread:$0]  %s709_s30, 64, %s1380_s13, [#allocation15]  }
 0x4e1   :  { %1135 = dma.done.wait [#allocation4], 32  }
 0x4e2   :  { %1136 = vsyncadd [#allocation4], 4294967264 }
 0x4e3   :  { %1137 = dma.done.wait [#allocation15], 64  }
 0x4e4   :  { %1138 = vsyncadd [#allocation15], 4294967232 }
 0x4e5   :  { %718 = vsyncpa [#allocation3], 1 }
 0x4e6   :  { %719 = vsyncpa [#allocation6], 1 }
 0x4e7   :  { %720 = vsyncpa [#allocation9], 1 }
 0x4e8   :  { %721 = vsyncpa [#allocation12], 1 }
 0x4e9   :  { %722 = vsyncpa [#allocation4], 1 }
 0x4ea   :  { %723 = vsyncpa [#allocation15], 1 }

</bundles_post_ra>
